<compile_context>
chip_gen: v5e
topology: v5e:2x2
jax: 0.10.0
libtpu: 0.0.40
codegen_flags: <defaults>
</compile_context>

<pallas_src>
import functools

import jax
import jax.numpy as jnp
from jax import lax
from jax.experimental import pallas as pl
from jax.experimental.pallas import tpu as pltpu

_F32_TINY = float(jnp.finfo(jnp.float32).tiny)


def _round_up(x, m):
    return ((x + m - 1) // m) * m


def _pick_tile(hw, cn, co, itemsize, want, budget_bytes=24 * 1024 * 1024):
    """Largest 128-multiple pixel tile whose working set fits the VMEM budget."""
    # double-buffered input tiles + rough f32 temporaries (x/t upcasts, e, et,
    # per-class products, (1,T) rows, accumulator).
    per_lane = 2 * (cn + co) * itemsize + 4 * (3 * cn + 4 * co + 8)
    t = min(int(want), max(128, budget_bytes // per_lane))
    t = max(128, (t // 128) * 128)
    t = min(t, _round_up(hw, 128))      # never bigger than the (rounded) row
    return t


def _ukd_kernel(*refs, alpha, n_old, tail, approx_recip, has_mask):
    """One (C, tile) pixel tile: per-pixel UKD loss accumulated per-lane."""
    if has_mask:
        x_ref, t_ref, m_ref, out_ref, acc_ref = refs
    else:
        x_ref, t_ref, out_ref, acc_ref = refs
        m_ref = None

    j = pl.program_id(1)
    last_j = pl.num_programs(1) - 1

    # Fresh per-lane accumulator at the start of each batch element's sweep.
    @pl.when(j == 0)
    def _():
        acc_ref[...] = jnp.zeros_like(acc_ref)

    x = x_ref[...].astype(jnp.float32)          # (C_new, T) student logits
    t = t_ref[...].astype(jnp.float32)          # (C_old, T) teacher logits
    if alpha != 1.0:                            # trace-time specialization
        t = t * jnp.float32(alpha)

    # --- stable logsumexp over ALL student classes (sublane axis) -----------
    m = jnp.max(x, axis=0, keepdims=True)       # (1, T)
    e = jnp.exp(x - m)                          # (C_new, T)
    s_all = jnp.sum(e, axis=0, keepdims=True)   # (1, T)

    # --- "unbiased background": sum over classes {0} U {n_old .. C_new-1} ---
    # Static sublane slices instead of iota+where; clamp away from 0 so the
    # log below can never return -inf when the whole subset underflows.
    s_bkg = e[0:1, :] + jnp.sum(e[n_old:, :], axis=0, keepdims=True)
    s_bkg = jnp.maximum(s_bkg, jnp.float32(_F32_TINY))

    # Single stacked log over (2, T) instead of two 1/8-density passes.
    logs = jnp.log(jnp.concatenate([s_all, s_bkg], axis=0))      # (2, T)
    log_s_all = logs[0:1, :]
    out_bkg = logs[1:2, :] - log_s_all          # log p(bkg U new)
    den = log_s_all + m                         # logsumexp(inputs, dim=class)

    # --- teacher soft labels: softmax over old classes (kept unnormalized) --
    tmax = jnp.max(t, axis=0, keepdims=True)
    et = jnp.exp(t - tmax)                      # (C_old, T)
    s_t = jnp.sum(et, axis=0, keepdims=True)    # (1, T)

    # weighted sum of log-terms: class 0 -> unbiased bkg, 1..n_old-1 -> log-sm
    num = et[0:1, :] * out_bkg                  # (1, T)
    if n_old > 1:
        num = num + jnp.sum(et[1:, :] * (x[1:n_old, :] - den),
                            axis=0, keepdims=True)

    # 1/n_old is folded into the final scalar in the wrapper.
    loss = num * pl.reciprocal(s_t, approx=approx_recip)          # (1, T)

    if has_mask:
        loss = loss * m_ref[...].astype(jnp.float32)

    # Pure per-lane VPU accumulation; partial last tile masked via lane iota.
    if tail:
        @pl.when(j == last_j)
        def _():
            lane = lax.broadcasted_iota(jnp.int32, loss.shape, 1)
            acc_ref[...] += jnp.where(lane < tail, loss, 0.0)

        @pl.when(j != last_j)
        def _():
            acc_ref[...] += loss
    else:
        acc_ref[...] += loss

    # Single cross-lane reduce + dense (8,128) store per batch element.
    @pl.when(j == last_j)
    def _():
        out_ref[...] = jnp.zeros_like(out_ref) + jnp.sum(acc_ref[...])


def unbiased_kd_loss(inputs_nchw, targets_nchw, mask_nhw=None, *,
                     reduction="mean", alpha=1.0, tile_n=16384,
                     approx_recip=True):
    """Matches UnbiasedKnowledgeDistillationLoss.forward for 'mean'/'sum'."""
    N, Cn, H, W = inputs_nchw.shape
    Nt, Co, Ht, Wt = targets_nchw.shape
    assert (N, H, W) == (Nt, Ht, Wt), "inputs/targets spatial mismatch"
    assert Cn > Co, "inputs must have more classes than targets (new classes)"
    HW = H * W
    M = N * HW

    itemsize = jnp.dtype(inputs_nchw.dtype).itemsize
    tile = _pick_tile(HW, Cn, Co, itemsize, want=tile_n)
    jblocks = pl.cdiv(HW, tile)
    tail = HW - (jblocks - 1) * tile
    tail = 0 if tail == tile else tail          # 0 -> no partial last tile

    # Free reshape (merges trailing contiguous dims only): C stays on the
    # sublane axis, H*W fills the lane axis.  No transpose, no HBM copy.
    x = inputs_nchw.reshape(N, Cn, HW)
    t = targets_nchw.reshape(N, Co, HW)

    has_mask = mask_nhw is not None
    args = [x, t]
    in_specs = [
        pl.BlockSpec((pl.Squeezed(), Cn, tile), lambda n, j: (n, 0, j)),
        pl.BlockSpec((pl.Squeezed(), Co, tile), lambda n, j: (n, 0, j)),
    ]
    if has_mask:
        msk = mask_nhw.reshape(N, 1, HW).astype(jnp.bfloat16)   # half traffic
        args.append(msk)
        in_specs.append(
            pl.BlockSpec((pl.Squeezed(), 1, tile), lambda n, j: (n, 0, j)))

    kernel = functools.partial(
        _ukd_kernel, alpha=float(alpha), n_old=int(Co), tail=int(tail),
        approx_recip=bool(approx_recip), has_mask=has_mask)

    mask_bytes = 2 * M if has_mask else 0
    partials = pl.pallas_call(
        kernel,
        out_shape=jax.ShapeDtypeStruct((N * 8, 128), jnp.float32),
        grid_spec=pltpu.PrefetchScalarGridSpec(
            num_scalar_prefetch=0,
            grid=(N, jblocks),
            in_specs=in_specs,
            out_specs=pl.BlockSpec((8, 128), lambda n, j: (n, 0)),
            scratch_shapes=[pltpu.VMEM((1, tile), jnp.float32)],
        ),
        compiler_params=pltpu.CompilerParams(
            dimension_semantics=("parallel", "arbitrary"),
            vmem_limit_bytes=32 * 1024 * 1024),
        cost_estimate=pl.CostEstimate(
            flops=int(6 * M * (Cn + Co)),
            transcendentals=int(M * (Cn + Co + 3)),
            bytes_accessed=int(itemsize * M * (Cn + Co) + mask_bytes)),
    )(*args)

    total = jnp.sum(partials.reshape(N, 8, 128)[:, 0, 0])
    total = total * jnp.float32(1.0 / Co)       # fold the 1/n_old constant here

    if reduction == "mean":
        return -total / jnp.float32(M)          # torch.mean over all N*H*W pixels
    if reduction == "sum":
        return -total
    # TODO(synk): reduction='none' (per-pixel (N,H,W) map) is not implemented
    # in the Pallas path; only 'mean'/'sum' are supported here.
    raise NotImplementedError("reduction='none' not supported in Pallas path")


def _reference(inputs, targets, mask=None, *, reduction="mean", alpha=1.0):
    """Pure-JAX mirror of the PyTorch module."""
    Cn = inputs.shape[1]
    Co = targets.shape[1]
    new_cl = Cn - Co
    t = targets.astype(jnp.float32) * alpha
    new_bkg_idx = jnp.array([0] + list(range(Co, Cn)), dtype=jnp.int32)
    xf = inputs.astype(jnp.float32)
    den = jax.scipy.special.logsumexp(xf, axis=1)                    # (N,H,W)
    outputs_no_bgk = xf[:, 1:Cn - new_cl] - den[:, None]             # (N,Co-1,H,W)
    outputs_bkg = jax.scipy.special.logsumexp(
        jnp.take(xf, new_bkg_idx, axis=1), axis=1) - den             # (N,H,W)
    labels = jax.nn.softmax(t, axis=1)                               # (N,Co,H,W)
    loss = (labels[:, 0] * outputs_bkg +
            (labels[:, 1:] * outputs_no_bgk).sum(axis=1)) / Co
    if mask is not None:
        loss = loss * mask.astype(jnp.float32)
    if reduction == "mean":
        return -jnp.mean(loss)
    if reduction == "sum":
        return -jnp.sum(loss)
    return -loss


if __name__ == "__main__":
    key = jax.random.PRNGKey(0)
    k1, k2, k3 = jax.random.split(key, 3)

    N, C_new, C_old, H, W = 2, 8, 5, 16, 16
    inputs = jax.random.normal(k1, (N, C_new, H, W), dtype=jnp.float32)
    targets = jax.random.normal(k2, (N, C_old, H, W), dtype=jnp.float32)

    # Unmasked 'mean' path (mask specialized away at trace time).
    out = unbiased_kd_loss(inputs, targets, reduction="mean", alpha=1.0)
    out = jax.block_until_ready(out)
    ref = _reference(inputs, targets, reduction="mean", alpha=1.0)
    assert jnp.allclose(out, ref, rtol=5e-3, atol=5e-3), (out, ref)

    # Masked 'sum' path with alpha != 1 (mask shipped as bf16).
    mask = (jax.random.uniform(k3, (N, H, W)) > 0.5).astype(jnp.float32)
    out_m = unbiased_kd_loss(inputs, targets, mask, reduction="sum", alpha=0.7)
    out_m = jax.block_until_ready(out_m)
    ref_m = _reference(inputs, targets, mask, reduction="sum", alpha=0.7)
    assert jnp.allclose(out_m, ref_m, rtol=5e-3, atol=5e-3), (out_m, ref_m)

    print("KERNEL_OK")
</pallas_src>

<mosaic_0001>
module attributes {stable_mosaic.version = 11 : i64} {
  func.func @_ukd_kernel(%arg0: i32, %arg1: i32, %arg2: memref<1x8x256xf32, #tpu.memory_space<vmem>>, %arg3: memref<1x5x256xf32, #tpu.memory_space<vmem>>, %arg4: memref<8x128xf32, #tpu.memory_space<vmem>>, %arg5: memref<1x256xf32, #tpu.memory_space<vmem>>) attributes {dimension_semantics = [#tpu.dimension_semantics<parallel>, #tpu.dimension_semantics<arbitrary>], iteration_bounds = array<i64: 2, 1>, scalar_prefetch = 0 : i64, scratch_operands = 1 : i64, tpu.core_type = #tpu.core_type<tc>, window_params = [{transform_indices = @transform_0, window_bounds = array<i64: 1, 8, 256>}, {transform_indices = @transform_1, window_bounds = array<i64: 1, 5, 256>}, {transform_indices = @transform_2, window_bounds = array<i64: 8, 128>}]} {
    %c0_i32 = arith.constant 0 : i32
    %0 = arith.cmpi eq, %arg1, %c0_i32 : i32
    %1 = arith.extui %0 : i1 to i32
    %c0_i32_0 = arith.constant 0 : i32
    %2 = arith.cmpi ne, %1, %c0_i32_0 : i32
    scf.if %2 {
      %cst_18 = arith.constant 0.000000e+00 : f32
      %52 = vector.broadcast %cst_18 : f32 to vector<1x256xf32>
      %c0_19 = arith.constant 0 : index
      %c0_20 = arith.constant 0 : index
      %53 = vector.load %arg5[%c0_19, %c0_20] : memref<1x256xf32, #tpu.memory_space<vmem>>, vector<1x256xf32>
      tpu.vector_store %arg5[%c0_19, %c0_20], %52 {strides = array<i32>} : memref<1x256xf32, #tpu.memory_space<vmem>>, vector<1x256xf32>,
    } else {
    }
    %c0 = arith.constant 0 : index
    %c0_1 = arith.constant 0 : index
    %c0_2 = arith.constant 0 : index
    %3 = vector.load %arg2[%c0, %c0_1, %c0_2] : memref<1x8x256xf32, #tpu.memory_space<vmem>>, vector<1x8x256xf32>
    %4 = vector.shape_cast %3 : vector<1x8x256xf32> to vector<8x256xf32>
    %c0_3 = arith.constant 0 : index
    %c0_4 = arith.constant 0 : index
    %c0_5 = arith.constant 0 : index
    %5 = vector.load %arg3[%c0_3, %c0_4, %c0_5] : memref<1x5x256xf32, #tpu.memory_space<vmem>>, vector<1x5x256xf32>
    %6 = vector.shape_cast %5 : vector<1x5x256xf32> to vector<5x256xf32>
    %cst = arith.constant dense<0xFF800000> : vector<256xf32>
    %7 = vector.multi_reduction <maximumf>, %4, %cst [0] : vector<8x256xf32> to vector<256xf32>
    %8 = vector.shape_cast %7 : vector<256xf32> to vector<1x256xf32>
    %9 = vector.broadcast %8 : vector<1x256xf32> to vector<8x256xf32>
    %10 = arith.subf %4, %9 : vector<8x256xf32>
    %11 = math.exp %10 : vector<8x256xf32>
    %cst_6 = arith.constant dense<0.000000e+00> : vector<256xf32>
    %12 = vector.multi_reduction <add>, %11, %cst_6 [0] : vector<8x256xf32> to vector<256xf32>
    %13 = vector.shape_cast %12 : vector<256xf32> to vector<1x256xf32>
    %14 = vector.extract_strided_slice %11 {offsets = [0, 0], sizes = [1, 256], strides = [1, 1]} : vector<8x256xf32> to vector<1x256xf32>
    %15 = vector.extract_strided_slice %11 {offsets = [5, 0], sizes = [3, 256], strides = [1, 1]} : vector<8x256xf32> to vector<3x256xf32>
    %cst_7 = arith.constant dense<0.000000e+00> : vector<256xf32>
    %16 = vector.multi_reduction <add>, %15, %cst_7 [0] : vector<3x256xf32> to vector<256xf32>
    %17 = vector.shape_cast %16 : vector<256xf32> to vector<1x256xf32>
    %18 = arith.addf %14, %17 : vector<1x256xf32>
    %cst_8 = arith.constant 1.17549435E-38 : f32
    %19 = vector.broadcast %cst_8 : f32 to vector<1x256xf32>
    %20 = arith.maximumf %18, %19 : vector<1x256xf32>
    %21 = tpu.concatenate %13, %20 in 0 : vector<1x256xf32>, vector<1x256xf32> -> vector<2x256xf32>
    %22 = math.log %21 : vector<2x256xf32>
    %23 = vector.extract_strided_slice %22 {offsets = [0, 0], sizes = [1, 256], strides = [1, 1]} : vector<2x256xf32> to vector<1x256xf32>
    %24 = vector.extract_strided_slice %22 {offsets = [1, 0], sizes = [1, 256], strides = [1, 1]} : vector<2x256xf32> to vector<1x256xf32>
    %25 = arith.subf %24, %23 : vector<1x256xf32>
    %26 = arith.addf %23, %8 : vector<1x256xf32>
    %cst_9 = arith.constant dense<0xFF800000> : vector<256xf32>
    %27 = vector.multi_reduction <maximumf>, %6, %cst_9 [0] : vector<5x256xf32> to vector<256xf32>
    %28 = vector.shape_cast %27 : vector<256xf32> to vector<1x256xf32>
    %29 = vector.broadcast %28 : vector<1x256xf32> to vector<5x256xf32>
    %30 = arith.subf %6, %29 : vector<5x256xf32>
    %31 = math.exp %30 : vector<5x256xf32>
    %cst_10 = arith.constant dense<0.000000e+00> : vector<256xf32>
    %32 = vector.multi_reduction <add>, %31, %cst_10 [0] : vector<5x256xf32> to vector<256xf32>
    %33 = vector.shape_cast %32 : vector<256xf32> to vector<1x256xf32>
    %34 = vector.extract_strided_slice %31 {offsets = [0, 0], sizes = [1, 256], strides = [1, 1]} : vector<5x256xf32> to vector<1x256xf32>
    %35 = arith.mulf %34, %25 : vector<1x256xf32>
    %36 = vector.extract_strided_slice %31 {offsets = [1, 0], sizes = [4, 256], strides = [1, 1]} : vector<5x256xf32> to vector<4x256xf32>
    %37 = vector.extract_strided_slice %4 {offsets = [1, 0], sizes = [4, 256], strides = [1, 1]} : vector<8x256xf32> to vector<4x256xf32>
    %38 = vector.broadcast %26 : vector<1x256xf32> to vector<4x256xf32>
    %39 = arith.subf %37, %38 : vector<4x256xf32>
    %40 = arith.mulf %36, %39 : vector<4x256xf32>
    %cst_11 = arith.constant dense<0.000000e+00> : vector<256xf32>
    %41 = vector.multi_reduction <add>, %40, %cst_11 [0] : vector<4x256xf32> to vector<256xf32>
    %42 = vector.shape_cast %41 : vector<256xf32> to vector<1x256xf32>
    %43 = arith.addf %35, %42 : vector<1x256xf32>
    %44 = tpu.reciprocal %33 {approx = true} : vector<1x256xf32> -> vector<1x256xf32>
    %45 = arith.mulf %43, %44 : vector<1x256xf32>
    %c0_12 = arith.constant 0 : index
    %c0_13 = arith.constant 0 : index
    %46 = vector.load %arg5[%c0_12, %c0_13] : memref<1x256xf32, #tpu.memory_space<vmem>>, vector<1x256xf32>
    %47 = arith.addf %46, %45 : vector<1x256xf32>
    %c0_14 = arith.constant 0 : index
    %c0_15 = arith.constant 0 : index
    %48 = vector.load %arg5[%c0_14, %c0_15] : memref<1x256xf32, #tpu.memory_space<vmem>>, vector<1x256xf32>
    tpu.vector_store %arg5[%c0_14, %c0_15], %47 {strides = array<i32>} : memref<1x256xf32, #tpu.memory_space<vmem>>, vector<1x256xf32>,
    %c0_i32_16 = arith.constant 0 : i32
    %49 = arith.cmpi eq, %arg1, %c0_i32_16 : i32
    %50 = arith.extui %49 : i1 to i32
    %c0_i32_17 = arith.constant 0 : i32
    %51 = arith.cmpi ne, %50, %c0_i32_17 : i32
    scf.if %51 {
      %cst_18 = arith.constant 0.000000e+00 : f32
      %52 = vector.broadcast %cst_18 : f32 to vector<8x128xf32>
      %c0_19 = arith.constant 0 : index
      %c0_20 = arith.constant 0 : index
      %53 = vector.load %arg5[%c0_19, %c0_20] : memref<1x256xf32, #tpu.memory_space<vmem>>, vector<1x256xf32>
      %54 = vector.shape_cast %53 : vector<1x256xf32> to vector<1x1x256xf32>
      %cst_21 = arith.constant dense<0.000000e+00> : vector<1xf32>
      %55 = vector.multi_reduction <add>, %54, %cst_21 [1, 2] : vector<1x1x256xf32> to vector<1xf32>
      %56 = vector.shape_cast %55 : vector<1xf32> to vector<1x1x1xf32>
      %57 = vector.extract %56[0, 0, 0] : f32 from vector<1x1x1xf32>
      %58 = vector.broadcast %57 : f32 to vector<8x128xf32>
      %59 = arith.addf %52, %58 : vector<8x128xf32>
      %c0_22 = arith.constant 0 : index
      %c0_23 = arith.constant 0 : index
      %60 = vector.load %arg4[%c0_22, %c0_23] : memref<8x128xf32, #tpu.memory_space<vmem>>, vector<8x128xf32>
      tpu.vector_store %arg4[%c0_22, %c0_23], %59 {strides = array<i32>} : memref<8x128xf32, #tpu.memory_space<vmem>>, vector<8x128xf32>,
    } else {
    }
    return
  }
  func.func @transform_0(%arg0: i32, %arg1: i32) -> (i32, i32, i32) {
    %c0_i32 = arith.constant 0 : i32
    %c0_i32_0 = arith.constant 0 : i32
    return %arg0, %c0_i32, %arg1 : i32, i32, i32
  }
  func.func @transform_1(%arg0: i32, %arg1: i32) -> (i32, i32, i32) {
    %c0_i32 = arith.constant 0 : i32
    %c0_i32_0 = arith.constant 0 : i32
    return %arg0, %c0_i32, %arg1 : i32, i32, i32
  }
  func.func @transform_2(%arg0: i32, %arg1: i32) -> (i32, i32) {
    %c0_i32 = arith.constant 0 : i32
    %c0_i32_0 = arith.constant 0 : i32
    return %arg0, %c0_i32 : i32, i32
  }
}

</mosaic_0001>

<bundles_post_ra>
// kernel: tpu_custom_call.1
= control target key start
LH: loop header
LB: loop body
LE: loop exit
PB: predicated region body
PF: predicated region fallthrough
CT: control target
= control target key end

     0   :  { %7 = vsyncpa [#allocation4], 0  ;;  %s839_s0 = inlined_call_operand.vmem [shape: f32[2,8,256], index: 0, kind: input, shape index: {}]   ;;  %s840_s1 = inlined_call_operand.vmem [shape: f32[2,5,256], index: 1, kind: input, shape index: {}]   ;;  %s841_s2 = inlined_call_operand.hbm [shape: f32[16,128], index: 2, kind: output, shape index: {}]  }
   0x1   :  { %9 = vsyncpa [#allocation4 + $0x1], 0  ;;  %s702_s9 = smov 0   ;;  %s704_s10 = smov 0  }
   0x2   :  { %s706_s11 = smov 0   ;;  %s708_s12 = smov 0  }
   0x3   :  { %s710_s13 = smov 0   ;;  %s712_s14 = smov 0  }
   0x4 LB: > { %s516_s15 = sadd.s32 4294967295, %s684_s14   ;;  %s517_s16 = sadd.s32 4294967294, %s684_s14   ;;  %s684_s14 = sphi %s712_s14, %s15_s14   ;;  %s680_s13 = sphi %s710_s13, %s850_s13   ;;  %s676_s12 = sphi %s708_s12, %s849_s12   ;;  %s672_s11 = sphi %s706_s11, %s848_s11   ;;  %s668_s10 = sphi %s704_s10, %s847_s10   ;;  %s664_s9 = sphi %s702_s9, %s846_s9  }
   0x5   : > { %s27_s17 = sadd.s32 1, %s680_s13  ;;  %s90_s18 = sadd.s32 1, %s672_s11 }
   0x6   : > { %p29_p0 = scmp.ge.s32.totalorder %s27_s17, 2  ;;  %p100_p1 = scmp.ne.s32.totalorder %s672_s11, %s668_s10 }
   0x7   : > { %p101_p2 = scmp.eq.s32.totalorder %s516_s15, 1  ;;  %p106_p3 = scmp.ne.s32.totalorder %s668_s10, %s664_s9 }
   0x8   : > { %s852_s17 = smov (%p29_p0, %s27_s17), 0  ;;  %p107_p5 = scmp.eq.s32.totalorder %s517_s16, 1 }
   0x9   : > { %p742_p4 = por %p101_p2, %p100_p1  ;;  %s87_s20 = ssub.s32 %s680_s13, %s852_s17 }
   0xa   : > { %p520_p6 = scmp.ge.s32.totalorder %s684_s14, 1  ;;  %p88_p7 = scmp.eq.s32.totalorder %s87_s20, 0 }
   0xb   : > { %p749_p8 = por %p107_p5, %p106_p3  ;;  %p151_p9 = scmp.lt.s32.totalorder %s684_s14, 3 }
   0xc   : > { %s755_s22 = scalar_select %p88_p7, %s672_s11, %s90_s18  }
   0xd   : > { %p152_p10 = pnand %p520_p6, %p151_p9 }
   0xe   : > { %p187_p11 = scmp.lt.s32.totalorder (!%p152_p10), %s676_s12, 1  ;;  %s183_s3 = sand.u32 (!%p152_p10), 1, %s668_s10  }
   0xf   : > { %155 = sbr.rel (%p152_p10) target bundleno = 307 (0x133), region = 28  ;;  %s521_s4 = sshll.u32 (!%p152_p10), %s183_s3, 3 }
  0x10   : > { %s527_s5 = sshll.u32 (!%p152_p10), %s676_s12, 3  ;;  %s185_s15 = scalar_lea.vmem (!%p152_p10), [#allocation3], %s521_s4 }
  0x11   : > { %s420_s8 = scalar_lea.hbm (!%p152_p10), %s841_s2, %s527_s5  ;;  %s422_s16 = sshll.u32 (!%p152_p10), %s185_s15, 4  ;;  %s423_s16 = int_to_ptr.vmem [resolvable:$true] %s422_s16 }
  0x12   : > { %s424_s18 = sshll.u32 (!%p152_p10), %s420_s8, 4  ;;  %s425_s18 = int_to_ptr.hbm [resolvable:$true] %s424_s18 }
  0x14   : > { %v210_v0 = vlaneseq  ;;  %s188_s23 = scalar_select %p187_p11, %s676_s12, 1  ;;  %v686_v2 = vmov 0.0   ;;  %vm297_vm1 = vcmask 1044480   ;;  %vm255_vm2 = vcmask 1042432  }
  0x15   : > { %vm280_vm3 = vcmask 1040384   ;;  %vm352_vm4 = vcmask 1043456  }
  0x16   : > { %vm759_vm0 = vcmp.lt.s32.totalorder %v210_v0, 256  ;;  %s530_s24 = sshll.u32 %s188_s23, 4  ;;  %s410_s23 = scalar_lea.sflag [#allocation4], %s183_s3 }
  0x17   : > { %214 = vst.msk [vmem:[#allocation2] sm:$0x3] %vm759_vm0, %v686_v2  ;;  %s194_s27 = scalar_lea.vmem %s839_s0, %s530_s24  ;;  %s204_s30 = scalar_lea.vmem %s840_s1, %s530_s24 }
  0x18   : > { %v771_v3 = vld [vmem:[%s194_s27] sm:$0xff]  ;;  %v773_v4 = vld [vmem:[%s194_s27 + $0x8] sm:$0xff]  ;;  %s620_s24 = sshra.s32 %s425_s18, 4  ;;  %s626_s27 = scalar_lea.hbm %s841_s2, 16  ;;  %s621_s24 = int_to_ptr.hbm [resolvable:$true] %s620_s24 }
  0x19   : > { %v219_v5 = vrot.slane %v771_v3, 4  ;;  %v225_v6 = vrot.slane %v773_v4, 4  ;;  %v218_v7 = vld [vmem:[%s204_s30 + $0x8] sm:$0x1f]  ;;  %v217_v10 = vld [vmem:[%s204_s30] sm:$0x1f]  ;;  %p627_p1 = scmp.lt.s32.totalorder %s621_s24, %s841_s2 }
  0x1a   : > { %v305_v13 = vsel %vm297_vm1, %v218_v7, -inf  ;;  %v298_v17 = vsel %vm297_vm1, %v217_v10, -inf  ;;  %s622_s25 = scalar_lea.hbm %s621_s24, 8 }
  0x1b   : > { %v220_v8 = vmax.f32 %v771_v3, %v219_v5  ;;  %v226_v9 = vmax.f32 %v773_v4, %v225_v6  ;;  %v306_v14 = vrot.slane %v305_v13, 4  ;;  %v299_v18 = vrot.slane %v298_v17, 4  ;;  %p623_p12 = scmp.ne.s32.totalorder %s621_s24, %s622_s25  ;;  %p628_p2 = scmp.lt.s32.totalorder %s626_s27, %s622_s25 }
  0x1d   : > { %v221_v11 = vrot.slane %v220_v8, 2  ;;  %v227_v12 = vrot.slane %v226_v9, 2  ;;  %v307_v19 = vmax.f32 %v305_v13, %v306_v14  ;;  %v300_v22 = vmax.f32 %v298_v17, %v299_v18  ;;  %p624_p13 = pnand %p623_p12, %p742_p4  ;;  %p629_p3 = por %p628_p2, %p627_p1 }
  0x1f   : > { %v222_v15 = vmax.f32 %v220_v8, %v221_v11  ;;  %v228_v16 = vmax.f32 %v226_v9, %v227_v12  ;;  %v308_v25 = vrot.slane %v307_v19, 2  ;;  %v301_v26 = vrot.slane %v300_v22, 2  ;;  %p625_p0 = pneg %p624_p13 }
  0x21   : > { %v223_v20 = vrot.slane %v222_v15, 1  ;;  %v229_v21 = vrot.slane %v228_v16, 1  ;;  %v309_v31 = vmax.f32 %v307_v19, %v308_v25  ;;  %v302_v32 = vmax.f32 %v300_v22, %v301_v26  ;;  %p630_p5 = pnand %p629_p3, %p625_p0 }
  0x23   : > { %v781_v23 = vmax.f32 %v222_v15, %v223_v20  ;;  %v783_v24 = vmax.f32 %v228_v16, %v229_v21  ;;  %v310_v33 = vrot.slane %v309_v31, 1  ;;  %v303_v34 = vrot.slane %v302_v32, 1 }
  0x25   : > { %v231_v27 = vsub.f32 %v771_v3, %v781_v23  ;;  %v232_v28 = vsub.f32 %v773_v4, %v783_v24  ;;  %v311_v36 = vmax.f32 %v309_v31, %v310_v33  ;;  %v304_v40 = vmax.f32 %v302_v32, %v303_v34 }
  0x27   : > { %v233_v29 = vmul.f32 1.442695, %v231_v27  ;;  %v235_v30 = vmul.f32 1.442695, %v232_v28  ;;  %v313_v48 = vsub.f32 %v218_v7, %v311_v36  ;;  %v312_v50 = vsub.f32 %v217_v10, %v304_v40 }
  0x29   : > { %590 = vpow2.f32 %v233_v29  ;;  %v316_v56 = vmul.f32 1.442695, %v313_v48  ;;  %v314_v58 = vmul.f32 1.442695, %v312_v50 }
  0x2a   : > { %592 = vpow2.f32 %v235_v30 }
  0x2b   : > { %594 = vpow2.f32 %v316_v56 }
  0x2c   : > { %596 = vpow2.f32 %v314_v58 }
  0x2f   : > { %v591_v35 = vpop.eup %590 }
  0x30   : > { %v593_v37 = vpop.eup %592  ;;  %v237_v38 = vrot.slane %v591_v35, 4  ;;  %v251_v39 = vrot.slane %v591_v35, 5 }
  0x31   : > { %v243_v41 = vrot.slane %v593_v37, 4  ;;  %v252_v42 = vrot.slane %v593_v37, 5  ;;  %v595_v10 = vpop.eup %594 }
  0x32   : > { %v238_v43 = vadd.f32 %v591_v35, %v237_v38  ;;  %v256_v44 = vsel %vm255_vm2, %v251_v39, 0.0  ;;  %v597_v13 = vpop.eup %596  ;;  %v325_v18 = vsel %vm297_vm1, %v595_v10, 0.0 }
  0x33   : > { %v244_v45 = vadd.f32 %v593_v37, %v243_v41  ;;  %v257_v46 = vrot.slane %v256_v44, 4  ;;  %v263_v47 = vsel %vm255_vm2, %v252_v42, 0.0  ;;  %v318_v20 = vsel %vm297_vm1, %v597_v13, 0.0 }
  0x34   : > { %v264_v49 = vrot.slane %v263_v47, 4  ;;  %v239_v51 = vrot.slane %v238_v43, 2  ;;  %v326_v22 = vrot.slane %v325_v18, 4  ;;  %v319_v25 = vrot.slane %v318_v20, 4 }
  0x35   : > { %v258_v52 = vadd.f32 %v257_v46, %v256_v44  ;;  %v245_v53 = vrot.slane %v244_v45, 2 }
  0x36   : > { %v265_v54 = vadd.f32 %v264_v49, %v263_v47  ;;  %v240_v59 = vadd.f32 %v239_v51, %v238_v43  ;;  %v327_v26 = vadd.f32 %v326_v22, %v325_v18  ;;  %v320_v28 = vadd.f32 %v319_v25, %v318_v20 }
  0x37   : > { %v259_v55 = vrot.slane %v258_v52, 2  ;;  %v246_v61 = vadd.f32 %v245_v53, %v244_v45 }
  0x38   : > { %v266_v57 = vrot.slane %v265_v54, 2  ;;  %v241_v2 = vrot.slane %v240_v59, 1  ;;  %v328_v33 = vrot.slane %v327_v26, 2 }
  0x39   : > { %v260_v60 = vadd.f32 %v259_v55, %v258_v52  ;;  %v247_v6 = vrot.slane %v246_v61, 1 }
  0x3a   : > { %v267_v62 = vadd.f32 %v266_v57, %v265_v54  ;;  %v242_v11 = vadd.f32 %v241_v2, %v240_v59  ;;  %v329_v38 = vadd.f32 %v328_v33, %v327_v26 }
  0x3b   : > { %v261_v63 = vrot.slane %v260_v60, 1  ;;  %v248_v14 = vadd.f32 %v247_v6, %v246_v61 }
  0x3c   : > { %v268_v0 = vrot.slane %v267_v62, 1  ;;  %v330_v46 = vrot.slane %v329_v38, 1 }
  0x3d   : > { %v262_v5 = vadd.f32 %v261_v63, %v260_v60 }
  0x3e   : > { %v269_v7 = vadd.f32 %v268_v0, %v267_v62  ;;  %v331_v53 = vadd.f32 %v330_v46, %v329_v38 }
  0x3f   : > { %v270_v8 = vadd.f32 %v591_v35, %v262_v5  ;;  %v321_v35 = vrot.slane %v320_v28, 2 }
  0x40   : > { %v271_v9 = vadd.f32 %v593_v37, %v269_v7 }
  0x41   : > { %v272_v12 = vmax.f32 %v270_v8, 1.1754944e-38  ;;  %v322_v40 = vadd.f32 %v321_v35, %v320_v28 }
  0x42   : > { %v273_v15 = vmax.f32 %v271_v9, 1.1754944e-38 }
  0x43   : > { %v276_v16 = vrot.slane %v272_v12, 7 }
  0x44   : > { %v277_v17 = vrot.slane %v273_v15, 7  ;;  %v373_v15 = vld [vmem:[#allocation2] sm:$0x3] }
  0x45   : > { %v281_v19 = vsel %vm280_vm3, %v242_v11, %v276_v16 }
  0x46   : > { %v282_v21 = vsel %vm280_vm3, %v248_v14, %v277_v17  ;;  %598 = vlog2.f32 %v281_v19 }
  0x47   : > { %600 = vlog2.f32 %v282_v21 }
  0x48   : > { %602 = vrcp.f32 %v331_v53 }
  0x4c   : > { %v599_v27 = vpop.eup %598 }
  0x4d   : > { %v601_v29 = vpop.eup %600  ;;  %v284_v30 = vmul.f32 0.6931472, %v599_v27 }
  0x4e   : > { %v286_v31 = vmul.f32 0.6931472, %v601_v29  ;;  %v603_v6 = vpop.eup %602 }
  0x4f   : > { %v295_v32 = vadd.f32 %v284_v30, %v781_v23  ;;  %v289_v43 = vrot.slane %v284_v30, 7  ;;  %v323_v23 = vrot.slane %v322_v40, 1 }
  0x50   : > { %v296_v34 = vadd.f32 %v286_v31, %v783_v24  ;;  %v290_v45 = vrot.slane %v286_v31, 7 }
  0x51   : > { %v340_v36 = vperm.slane %v295_v32, 0  ;;  %v293_v24 = vsub.f32 %v284_v30, %v289_v43 }
  0x52   : > { %v341_v37 = vperm.slane %v296_v34, 0  ;;  %v294_v52 = vsub.f32 %v286_v31, %v290_v45 }
  0x53   : > { %v342_v39 = vsub.f32 %v771_v3, %v340_v36  ;;  %v324_v3 = vadd.f32 %v323_v23, %v322_v40 }
  0x54   : > { %v343_v41 = vsub.f32 %v773_v4, %v341_v37  ;;  %v334_v4 = vrot.slane %v293_v24, 1  ;;  %v335_v58 = vrot.slane %v294_v52, 1 }
  0x55   : > { %v344_v42 = vmul.f32 %v597_v13, %v342_v39  ;;  %604 = vrcp.f32 %v324_v3 }
  0x56   : > { %v345_v44 = vmul.f32 %v595_v10, %v343_v41  ;;  %v338_v62 = vmul.f32 %v597_v13, %v334_v4  ;;  %v339_v0 = vmul.f32 %v595_v10, %v335_v58 }
  0x57   : > { %v348_v47 = vrot.slane %v344_v42, 1 }
  0x58   : > { %v349_v48 = vrot.slane %v345_v44, 1 }
  0x59   : > { %v353_v49 = vsel %vm352_vm4, %v348_v47, 0.0 }
  0x5a   : > { %v354_v50 = vrot.slane %v353_v49, 4  ;;  %v360_v51 = vsel %vm352_vm4, %v349_v48, 0.0 }
  0x5b   : > { %v361_v54 = vrot.slane %v360_v51, 4  ;;  %v605_v8 = vpop.eup %604 }
  0x5c   : > { %v355_v55 = vadd.f32 %v354_v50, %v353_v49 }
  0x5d   : > { %v362_v56 = vadd.f32 %v361_v54, %v360_v51 }
  0x5e   : > { %v356_v57 = vrot.slane %v355_v55, 2 }
  0x5f   : > { %v363_v59 = vrot.slane %v362_v56, 2 }
  0x60   : > { %v357_v60 = vadd.f32 %v356_v57, %v355_v55 }
  0x61   : > { %v364_v61 = vadd.f32 %v363_v59, %v362_v56 }
  0x62   : > { %v358_v63 = vrot.slane %v357_v60, 1 }
  0x63   : > { %v365_v2 = vrot.slane %v364_v61, 1 }
  0x64   : > { %v359_v5 = vadd.f32 %v358_v63, %v357_v60 }
  0x65   : > { %v366_v7 = vadd.f32 %v365_v2, %v364_v61 }
  0x66   : > { %v367_v9 = vadd.f32 %v359_v5, %v338_v62 }
  0x67   : > { %v368_v11 = vadd.f32 %v366_v7, %v339_v0 }
  0x68   : > { %v371_v12 = vmul.f32 %v605_v8, %v367_v9 }
  0x69   : > { %v372_v14 = vmul.f32 %v603_v6, %v368_v11 }
  0x6b   : > { %v376_v16 = vrot.slane %v372_v14, 7 }
  0x6d   : > { %v377_v17 = vsel %vm280_vm3, %v371_v12, %v376_v16 }
  0x6e   : > { %v379_v18 = vadd.f32 %v377_v17, %v373_v15 }
  0x70   : > { %384 = vst.msk [vmem:[#allocation2] sm:$0x3] %vm759_vm0, %v379_v18 }
  0x77   : > { %v388_v13 = vld [vmem:[#allocation2] sm:$0x3] }
  0x78   : > { %v390_v10 = vperm.slane %v388_v13, 0  ;;  %v391_v19 = vperm.slane %v388_v13, 1 }
  0x7a   : > { %v394_v20 = vsel %vm280_vm3, %v390_v10, 0.0  ;;  %v395_v21 = vsel %vm280_vm3, %v391_v19, 0.0 }
  0x7b   : > { %v396_v22 = vadd.f32 %v395_v21, %v394_v20 }
  0x7d   : > { %397 = vadd.xlane.f32.xlu0 %v396_v22 }
  0xf0   : > { %v398_v25 = vpop.xlane.xlu0 %397 }
  0xf1   : > { %v399_v26 = vrot.slane %v398_v25, 4 }
  0xf3   : > { %v400_v27 = vadd.f32 %v399_v26, %v398_v25 }
  0xf5   : > { %v401_v28 = vrot.slane %v400_v27, 2 }
  0xf7   : > { %v402_v29 = vadd.f32 %v401_v28, %v400_v27 }
  0xf9   : > { %v403_v30 = vrot.slane %v402_v29, 1 }
  0xfb   : > { %v404_v31 = vadd.f32 %v403_v30, %v402_v29 }
  0xfd   : > { %532 = vpush %v404_v31 }
 0x12e   : > { %s533_s20 = spop %532 }
 0x12f   : > { %v406_v1 = vstv %s533_s20 }
 0x130   : > { %408 = vst [vmem:[%s185_s15] sm:$0xff] %v406_v1 }
 0x131   : > { %633 = shalt.err (!%p630_p5)
}
 0x132   : > { %534 = dma.vmem_to_hbm [thread:$0]  (%p742_p4), %s423_s16, 128, %s425_s18, %s410_s23  }
 0x133 PF: > { %p540_p6 = scmp.ge.s32.totalorder %s684_s14, 2  ;;  %s436_s30 = sand.u32 1, %s664_s9  }
 0x134   : > { %s437_s3 = scalar_lea.sflag [#allocation4], %s436_s30 }
 0x135   : > { %p537_p7 = pnand %p540_p6, %p749_p8 }
 0x137   : > { %p538_p9 = pneg %p537_p7 }
 0x139   : > { %659 = dma.done.wait (%p538_p9), %s437_s3, 128  }
 0x13a   : > { %661 = vsyncadd (%p538_p9), %s437_s3, 4294967168  ;;  %s15_s14 = sadd.s32 1, %s684_s14   ;;  %s846_s9 = smov %s668_s10 }
 0x13b   : > { %p12_p10 = scmp.ge.s32.totalorder %s15_s14, 4   ;;  %s847_s10 = smov %s672_s11 }
 0x13c   : > { %s848_s11 = smov %s755_s22  ;;  %s849_s12 = smov %s680_s13 }
 0x13d   : > { %s850_s13 = smov %s852_s17  ;;  %14 = sbr.rel (!%p12_p10) target bundleno = 4 (0x4), region = 74 }
 0x142   :  { %443 = vsyncpa [#allocation4], 1 }
 0x143   :  { %445 = vsyncpa [#allocation4 + $0x1], 1 }

</bundles_post_ra>
